<compile_context>
chip_gen: v5e
topology: v5e:2x2
jax: 0.10.0
libtpu: 0.0.40
codegen_flags: <defaults>
</compile_context>

<pallas_src>
import jax
import jax.numpy as jnp
from jax.experimental import pallas as pl
from jax.experimental.pallas import tpu as pltpu

IN_DIM = 784
HID_DIM = 256
OUT_DIM = 10
OUT_PAD = 128    # 10 -> 128: lane-dense second matmul + unmasked output stores
TB_MAX = 1024    # batch-tile cap: x tile 1024x784 f32 ~3.1 MiB -> ~11-12 MiB total
                 # live VMEM with double buffering; fits every chip's scoped VMEM.


def mlp_kernel(x_ref, w1_ref, b1_ref, w2_ref, b2_ref, o_ref):
    # In-kernel bf16 cast of the activation tile (VPU, hidden under the x DMA).
    x = x_ref[...].astype(jnp.bfloat16)
    # Hidden layer: (tb, 784) @ (784, 256) -> f32 accumulate, + bias, ReLU.
    h = jnp.dot(x, w1_ref[...], preferred_element_type=jnp.float32)
    h = jnp.maximum(h + b1_ref[...], 0.0)
    # Output layer: (tb, 256) @ (256, 128) -> f32 accumulate, + bias.
    out = jnp.dot(h.astype(jnp.bfloat16), w2_ref[...],
                  preferred_element_type=jnp.float32)
    o_ref[...] = (out + b2_ref[...]).astype(o_ref.dtype)


def _round_up(n, m):
    return ((n + m - 1) // m) * m


def _pick_batch_tile(B):
    if B < 16:
        # One block equal to the full batch (full-array-dim exception); no
        # batch padding at all for tiny batches.
        return B
    # Multiple of 8 (sublane rule), >= 2 grid steps so both v7x TensorCores
    # get work, capped at TB_MAX for VMEM.
    return min(TB_MAX, _round_up((B + 1) // 2, 8))


@jax.jit
def mlp_forward(x, w1, b1, w2, b2):
    """x: (B, 784) f32; w1: (784,256); b1: (1,256); w2: (256,10); b2: (1,10)."""
    B = x.shape[0]
    tb = _pick_batch_tile(B)
    grid = pl.cdiv(B, tb)  # last block may be partial; Pallas masks OOB writes

    # Weights to bf16 (halves weight DMA, full MXU rate on v6e/v7x); classifier
    # dim padded 10 -> 128. Biases stay f32. x is passed through untouched.
    w1_b = w1.astype(jnp.bfloat16)
    w2_b = jnp.pad(w2, ((0, 0), (0, OUT_PAD - OUT_DIM))).astype(jnp.bfloat16)
    b1_f = b1.astype(jnp.float32)
    b2_f = jnp.pad(b2, ((0, 0), (0, OUT_PAD - OUT_DIM))).astype(jnp.float32)

    out_padded = pl.pallas_call(
        mlp_kernel,
        out_shape=jax.ShapeDtypeStruct((B, OUT_PAD), jnp.float32),
        grid=(grid,),
        in_specs=[
            pl.BlockSpec((tb, IN_DIM), lambda i: (i, 0)),        # x tile (f32)
            pl.BlockSpec((IN_DIM, HID_DIM), lambda i: (0, 0)),   # w1 (resident)
            pl.BlockSpec((1, HID_DIM), lambda i: (0, 0)),        # b1 (resident)
            pl.BlockSpec((HID_DIM, OUT_PAD), lambda i: (0, 0)),  # w2 (resident)
            pl.BlockSpec((1, OUT_PAD), lambda i: (0, 0)),        # b2 (resident)
        ],
        out_specs=pl.BlockSpec((tb, OUT_PAD), lambda i: (i, 0)),
        compiler_params=pltpu.CompilerParams(
            # Batch tiles are independent -> shard across TCs on v7x megacore.
            dimension_semantics=("parallel",),
            vmem_limit_bytes=32 * 1024 * 1024),
    )(x, w1_b, b1_f, w2_b, b2_f)

    # Slice the classifier padding back off: (B, 10), matching PyTorch.
    return out_padded[:, :OUT_DIM]


def init_params(key):
    # Deterministic init mimicking nn.Linear's U(-1/sqrt(fan_in), 1/sqrt(fan_in)).
    k1, k2, k3, k4 = jax.random.split(key, 4)
    bound1 = 1.0 / (IN_DIM ** 0.5)
    bound2 = 1.0 / (HID_DIM ** 0.5)
    w1 = jax.random.uniform(k1, (IN_DIM, HID_DIM), jnp.float32, -bound1, bound1)
    b1 = jax.random.uniform(k2, (1, HID_DIM), jnp.float32, -bound1, bound1)
    w2 = jax.random.uniform(k3, (HID_DIM, OUT_DIM), jnp.float32, -bound2, bound2)
    b2 = jax.random.uniform(k4, (1, OUT_DIM), jnp.float32, -bound2, bound2)
    return w1, b1, w2, b2


def _ref_bf16(x, w1, b1, w2, b2):
    # Reference with identical bf16-operand / f32-accumulate semantics.
    xb = x.astype(jnp.bfloat16)
    h = jnp.dot(xb, w1.astype(jnp.bfloat16),
                preferred_element_type=jnp.float32) + b1
    h = jnp.maximum(h, 0.0)
    return jnp.dot(h.astype(jnp.bfloat16), w2.astype(jnp.bfloat16),
                   preferred_element_type=jnp.float32) + b2


if __name__ == "__main__":
    key = jax.random.PRNGKey(0)
    kx, kp = jax.random.split(key)
    x = jax.random.uniform(kx, (2, IN_DIM), jnp.float32)  # like torch.rand(2, 784)
    w1, b1, w2, b2 = init_params(kp)

    out = mlp_forward(x, w1, b1, w2, b2)
    jax.block_until_ready(out)
    assert out.shape == (2, OUT_DIM)

    ref = _ref_bf16(x, w1, b1, w2, b2)
    assert jnp.allclose(out, ref, atol=1e-2, rtol=1e-2)

    # Loose check against pure-f32 math (bf16 operand rounding only).
    ref_f32 = jnp.maximum(x @ w1 + b1, 0.0) @ w2 + b2
    assert jnp.allclose(out, ref_f32, atol=5e-2, rtol=5e-2)

    # Multi-tile path: B=64 -> tb=32, grid of 2 parallel batch steps.
    x64 = jax.random.uniform(kx, (64, IN_DIM), jnp.float32)
    out64 = mlp_forward(x64, w1, b1, w2, b2)
    jax.block_until_ready(out64)
    assert out64.shape == (64, OUT_DIM)
    assert jnp.allclose(out64, _ref_bf16(x64, w1, b1, w2, b2),
                        atol=1e-2, rtol=1e-2)

    print("KERNEL_OK")
</pallas_src>

<mosaic_0001>
module attributes {stable_mosaic.version = 11 : i64} {
  func.func @mlp_kernel(%arg0: i32, %arg1: memref<2x784xf32, #tpu.memory_space<vmem>>, %arg2: memref<784x256xbf16, #tpu.memory_space<vmem>>, %arg3: memref<1x256xf32, #tpu.memory_space<vmem>>, %arg4: memref<256x128xbf16, #tpu.memory_space<vmem>>, %arg5: memref<1x128xf32, #tpu.memory_space<vmem>>, %arg6: memref<2x128xf32, #tpu.memory_space<vmem>>) attributes {dimension_semantics = [#tpu.dimension_semantics<parallel>], iteration_bounds = array<i64: 1>, scalar_prefetch = 0 : i64, scratch_operands = 0 : i64, tpu.core_type = #tpu.core_type<tc>, window_params = [{transform_indices = @transform_0, window_bounds = array<i64: 2, 784>}, {pipeline_mode = #tpu.pipeline_mode<synchronous>, transform_indices = @transform_1, window_bounds = array<i64: 784, 256>}, {pipeline_mode = #tpu.pipeline_mode<synchronous>, transform_indices = @transform_2, window_bounds = array<i64: 1, 256>}, {pipeline_mode = #tpu.pipeline_mode<synchronous>, transform_indices = @transform_3, window_bounds = array<i64: 256, 128>}, {pipeline_mode = #tpu.pipeline_mode<synchronous>, transform_indices = @transform_4, window_bounds = array<i64: 1, 128>}, {transform_indices = @transform_5, window_bounds = array<i64: 2, 128>}]} {
    %c0 = arith.constant 0 : index
    %c0_0 = arith.constant 0 : index
    %0 = vector.load %arg1[%c0, %c0_0] : memref<2x784xf32, #tpu.memory_space<vmem>>, vector<2x784xf32>
    %1 = arith.truncf %0 : vector<2x784xf32> to vector<2x784xbf16>
    %c0_1 = arith.constant 0 : index
    %c0_2 = arith.constant 0 : index
    %2 = vector.load %arg2[%c0_1, %c0_2] : memref<784x256xbf16, #tpu.memory_space<vmem>>, vector<784x256xbf16>
    %cst = arith.constant dense<0.000000e+00> : vector<2x256xf32>
    %3 = tpu.matmul %1, %2, %cst {dimension_numbers = #tpu.dot_dimension_numbers<[1], [0], [0], [1], [0, 0, 1, 1], [], []>} : vector<2x784xbf16>, vector<784x256xbf16>, vector<2x256xf32> -> vector<2x256xf32>
    %c0_3 = arith.constant 0 : index
    %c0_4 = arith.constant 0 : index
    %4 = vector.load %arg3[%c0_3, %c0_4] : memref<1x256xf32, #tpu.memory_space<vmem>>, vector<1x256xf32>
    %5 = vector.broadcast %4 : vector<1x256xf32> to vector<2x256xf32>
    %6 = arith.addf %3, %5 : vector<2x256xf32>
    %cst_5 = arith.constant 0.000000e+00 : f32
    %7 = vector.broadcast %cst_5 : f32 to vector<2x256xf32>
    %8 = arith.maximumf %6, %7 : vector<2x256xf32>
    %9 = arith.truncf %8 : vector<2x256xf32> to vector<2x256xbf16>
    %c0_6 = arith.constant 0 : index
    %c0_7 = arith.constant 0 : index
    %10 = vector.load %arg4[%c0_6, %c0_7] : memref<256x128xbf16, #tpu.memory_space<vmem>>, vector<256x128xbf16>
    %cst_8 = arith.constant dense<0.000000e+00> : vector<2x128xf32>
    %11 = tpu.matmul %9, %10, %cst_8 {dimension_numbers = #tpu.dot_dimension_numbers<[1], [0], [0], [1], [0, 0, 1, 1], [], []>} : vector<2x256xbf16>, vector<256x128xbf16>, vector<2x128xf32> -> vector<2x128xf32>
    %c0_9 = arith.constant 0 : index
    %c0_10 = arith.constant 0 : index
    %12 = vector.load %arg5[%c0_9, %c0_10] : memref<1x128xf32, #tpu.memory_space<vmem>>, vector<1x128xf32>
    %13 = vector.broadcast %12 : vector<1x128xf32> to vector<2x128xf32>
    %14 = arith.addf %11, %13 : vector<2x128xf32>
    %c0_11 = arith.constant 0 : index
    %c0_12 = arith.constant 0 : index
    %15 = vector.load %arg6[%c0_11, %c0_12] : memref<2x128xf32, #tpu.memory_space<vmem>>, vector<2x128xf32>
    tpu.vector_store %arg6[%c0_11, %c0_12], %14 {strides = array<i32>} : memref<2x128xf32, #tpu.memory_space<vmem>>, vector<2x128xf32>,
    return
  }
  func.func @transform_0(%arg0: i32) -> (i32, i32) {
    %c0_i32 = arith.constant 0 : i32
    %c0_i32_0 = arith.constant 0 : i32
    return %arg0, %c0_i32 : i32, i32
  }
  func.func @transform_1(%arg0: i32) -> (i32, i32) {
    %c0_i32 = arith.constant 0 : i32
    %c0_i32_0 = arith.constant 0 : i32
    %c0_i32_1 = arith.constant 0 : i32
    return %c0_i32, %c0_i32_0 : i32, i32
  }
  func.func @transform_2(%arg0: i32) -> (i32, i32) {
    %c0_i32 = arith.constant 0 : i32
    %c0_i32_0 = arith.constant 0 : i32
    %c0_i32_1 = arith.constant 0 : i32
    return %c0_i32, %c0_i32_0 : i32, i32
  }
  func.func @transform_3(%arg0: i32) -> (i32, i32) {
    %c0_i32 = arith.constant 0 : i32
    %c0_i32_0 = arith.constant 0 : i32
    %c0_i32_1 = arith.constant 0 : i32
    return %c0_i32, %c0_i32_0 : i32, i32
  }
  func.func @transform_4(%arg0: i32) -> (i32, i32) {
    %c0_i32 = arith.constant 0 : i32
    %c0_i32_0 = arith.constant 0 : i32
    %c0_i32_1 = arith.constant 0 : i32
    return %c0_i32, %c0_i32_0 : i32, i32
  }
  func.func @transform_5(%arg0: i32) -> (i32, i32) {
    %c0_i32 = arith.constant 0 : i32
    %c0_i32_0 = arith.constant 0 : i32
    return %arg0, %c0_i32 : i32, i32
  }
}

</mosaic_0001>

<bundles_post_ra>
// kernel: mlp_forward.1
= control target key start
LH: loop header
LB: loop body
LE: loop exit
PB: predicated region body
PF: predicated region fallthrough
CT: control target
= control target key end

     0   :  { %vm644_vm0 = vcmask 130048   ;;  %s2321_s0 = inlined_call_operand.vmem [shape: f32[2,784], index: 0, kind: input, shape index: {}]   ;;  %s2322_s1 = inlined_call_operand.vmem [shape: bf16[784,256], index: 1, kind: input, shape index: {}]   ;;  %s2323_s2 = inlined_call_operand.vmem [shape: f32[1,256], index: 2, kind: input, shape index: {}]   ;;  %s2324_s3 = inlined_call_operand.vmem [shape: bf16[256,128], index: 3, kind: input, shape index: {}]   ;;  %s2325_s4 = inlined_call_operand.vmem [shape: f32[1,128], index: 4, kind: input, shape index: {}]   ;;  %s2326_s5 = inlined_call_operand.hbm [shape: f32[2,128], index: 5, kind: output, shape index: {}]  }
   0x1   :  { %v1067_v0 = vld [vmem:[%s2322_s1 + $0x70] sm:$0xf]  ;;  %v1482_v1 = vld [vmem:[%s2322_s1 + $0x74] sm:$0xf0]  ;;  %v1059_v11 = vld [vmem:[%s2322_s1 + $0x60] sm:$0xf] }
   0x2   :  { %v1195_v2 = vld [vmem:[%s2322_s1 + $0x170] sm:$0xf]  ;;  %v1068_v3 = vor.u32 %v1482_v1, %v1067_v0  ;;  %v1514_v4 = vld [vmem:[%s2322_s1 + $0x174] sm:$0xf0]  ;;  %v1480_v13 = vld [vmem:[%s2322_s1 + $0x64] sm:$0xf0] }
   0x3   :  { %v1259_v5 = vld [vmem:[%s2322_s1 + $0x1f0] sm:$0xf]  ;;  %v1530_v6 = vld [vmem:[%s2322_s1 + $0x1f4] sm:$0xf0]  ;;  %v1196_v7 = vor.u32 %v1514_v4, %v1195_v2  ;;  %v1187_v14 = vld [vmem:[%s2322_s1 + $0x160] sm:$0xf]  ;;  %v1060_v16 = vor.u32 %v1480_v13, %v1059_v11 }
   0x4   :  { %v1260_v8 = vor.u32 %v1530_v6, %v1259_v5  ;;  %v1131_v9 = vld [vmem:[%s2322_s1 + $0xf0] sm:$0xf]  ;;  %v1498_v10 = vld [vmem:[%s2322_s1 + $0xf4] sm:$0xf0]  ;;  %648 = vmatpush.bf16.msra.mxu0 %v1068_v3  ;;  %v1512_v15 = vld [vmem:[%s2322_s1 + $0x164] sm:$0xf0] }
   0x5   :  { %v1132_v12 = vor.u32 %v1498_v10, %v1131_v9  ;;  %674 = vmatpush.bf16.msra.mxu2 %v1196_v7  ;;  %v1188_v17 = vor.u32 %v1512_v15, %v1187_v14  ;;  %v1251_v18 = vld [vmem:[%s2322_s1 + $0x1e0] sm:$0xf]  ;;  %v1528_v19 = vld [vmem:[%s2322_s1 + $0x1e4] sm:$0xf0]  ;;  %v1051_v23 = vld [vmem:[%s2322_s1 + $0x50] sm:$0xf] }
   0x6   :  { %687 = vmatpush.bf16.msra.mxu3 %v1260_v8  ;;  %v1123_v20 = vld [vmem:[%s2322_s1 + $0xe0] sm:$0xf]  ;;  %v1252_v21 = vor.u32 %v1528_v19, %v1251_v18  ;;  %v1496_v22 = vld [vmem:[%s2322_s1 + $0xe4] sm:$0xf0]  ;;  %v1478_v24 = vld [vmem:[%s2322_s1 + $0x54] sm:$0xf0] }
   0x7   :  { %661 = vmatpush.bf16.msra.mxu1 %v1132_v12  ;;  %v1124_v25 = vor.u32 %v1496_v22, %v1123_v20  ;;  %v1179_v26 = vld [vmem:[%s2322_s1 + $0x150] sm:$0xf]  ;;  %v1510_v27 = vld [vmem:[%s2322_s1 + $0x154] sm:$0xf0]  ;;  %v1052_v29 = vor.u32 %v1478_v24, %v1051_v23  ;;  %v1043_v35 = vld [vmem:[%s2322_s1 + $0x40] sm:$0xf] }
   0x8   :  { %v1243_v28 = vld [vmem:[%s2322_s1 + $0x1d0] sm:$0xf]  ;;  %649 = vmatpush.bf16.msra.mxu0 %v1060_v16  ;;  %v1526_v30 = vld [vmem:[%s2322_s1 + $0x1d4] sm:$0xf0]  ;;  %v1180_v33 = vor.u32 %v1510_v27, %v1179_v26  ;;  %v1476_v36 = vld [vmem:[%s2322_s1 + $0x44] sm:$0xf0] }
   0x9   :  { %v1115_v31 = vld [vmem:[%s2322_s1 + $0xd0] sm:$0xf]  ;;  %v1494_v32 = vld [vmem:[%s2322_s1 + $0xd4] sm:$0xf0]  ;;  %675 = vmatpush.bf16.msra.mxu2 %v1188_v17  ;;  %v1244_v34 = vor.u32 %v1526_v30, %v1243_v28  ;;  %v1171_v37 = vld [vmem:[%s2322_s1 + $0x140] sm:$0xf]  ;;  %v1044_v44 = vor.u32 %v1476_v36, %v1043_v35 }
   0xa   :  { %688 = vmatpush.bf16.msra.mxu3 %v1252_v21  ;;  %v1116_v38 = vor.u32 %v1494_v32, %v1115_v31  ;;  %v1508_v39 = vld [vmem:[%s2322_s1 + $0x144] sm:$0xf0]  ;;  %v1235_v40 = vld [vmem:[%s2322_s1 + $0x1c0] sm:$0xf]  ;;  %v1035_v47 = vld [vmem:[%s2322_s1 + $0x30] sm:$0xf] }
   0xb   :  { %662 = vmatpush.bf16.msra.mxu1 %v1124_v25  ;;  %v1524_v41 = vld [vmem:[%s2322_s1 + $0x1c4] sm:$0xf0]  ;;  %v1107_v42 = vld [vmem:[%s2322_s1 + $0xc0] sm:$0xf]  ;;  %v1172_v45 = vor.u32 %v1508_v39, %v1171_v37  ;;  %v1474_v48 = vld [vmem:[%s2322_s1 + $0x34] sm:$0xf0] }
   0xc   :  { %v1492_v43 = vld [vmem:[%s2322_s1 + $0xc4] sm:$0xf0]  ;;  %650 = vmatpush.bf16.msra.mxu0 %v1052_v29  ;;  %v1236_v46 = vor.u32 %v1524_v41, %v1235_v40  ;;  %v1163_v49 = vld [vmem:[%s2322_s1 + $0x130] sm:$0xf]  ;;  %v1506_v51 = vld [vmem:[%s2322_s1 + $0x134] sm:$0xf0]  ;;  %v1036_v56 = vor.u32 %v1474_v48, %v1035_v47 }
   0xd   :  { %676 = vmatpush.bf16.msra.mxu2 %v1180_v33  ;;  %v1108_v50 = vor.u32 %v1492_v43, %v1107_v42  ;;  %v1227_v52 = vld [vmem:[%s2322_s1 + $0x1b0] sm:$0xf]  ;;  %v1522_v53 = vld [vmem:[%s2322_s1 + $0x1b4] sm:$0xf0]  ;;  %v1164_v57 = vor.u32 %v1506_v51, %v1163_v49  ;;  %v1027_v59 = vld [vmem:[%s2322_s1 + $0x20] sm:$0xf] }
   0xe   :  { %689 = vmatpush.bf16.msra.mxu3 %v1244_v34  ;;  %v1099_v54 = vld [vmem:[%s2322_s1 + $0xb0] sm:$0xf]  ;;  %v1490_v55 = vld [vmem:[%s2322_s1 + $0xb4] sm:$0xf0]  ;;  %v1228_v58 = vor.u32 %v1522_v53, %v1227_v52  ;;  %v1472_v60 = vld [vmem:[%s2322_s1 + $0x24] sm:$0xf0] }
   0xf   :  { %663 = vmatpush.bf16.msra.mxu1 %v1116_v38  ;;  %v1155_v61 = vld [vmem:[%s2322_s1 + $0x120] sm:$0xf]  ;;  %v1100_v62 = vor.u32 %v1490_v55, %v1099_v54  ;;  %v1504_v63 = vld [vmem:[%s2322_s1 + $0x124] sm:$0xf0]  ;;  %v1028_v4 = vor.u32 %v1472_v60, %v1027_v59  ;;  %v1019_v5 = vld [vmem:[%s2322_s1 + $0x10] sm:$0xf] }
  0x10   :  { %651 = vmatpush.bf16.msra.mxu0 %v1044_v44  ;;  %v1219_v0 = vld [vmem:[%s2322_s1 + $0x1a0] sm:$0xf]  ;;  %v1520_v1 = vld [vmem:[%s2322_s1 + $0x1a4] sm:$0xf0]  ;;  %v1470_v6 = vld [vmem:[%s2322_s1 + $0x14] sm:$0xf0]  ;;  %v1156_v7 = vor.u32 %v1504_v63, %v1155_v61 }
  0x11   :  { %677 = vmatpush.bf16.msra.mxu2 %v1172_v45  ;;  %v1091_v2 = vld [vmem:[%s2322_s1 + $0xa0] sm:$0xf]  ;;  %v1488_v3 = vld [vmem:[%s2322_s1 + $0xa4] sm:$0xf0]  ;;  %v1220_v8 = vor.u32 %v1520_v1, %v1219_v0  ;;  %v1147_v9 = vld [vmem:[%s2322_s1 + $0x110] sm:$0xf]  ;;  %v1020_v19 = vor.u32 %v1470_v6, %v1019_v5 }
  0x12   :  { %690 = vmatpush.bf16.msra.mxu3 %v1236_v46  ;;  %v1502_v10 = vld [vmem:[%s2322_s1 + $0x114] sm:$0xf0]  ;;  %v1211_v11 = vld [vmem:[%s2322_s1 + $0x190] sm:$0xf]  ;;  %v1092_v12 = vor.u32 %v1488_v3, %v1091_v2  ;;  %v1011_v16 = vld [vmem:[%s2322_s1] sm:$0xf] }
  0x13   :  { %664 = vmatpush.bf16.msra.mxu1 %v1108_v50  ;;  %v1518_v13 = vld [vmem:[%s2322_s1 + $0x194] sm:$0xf0]  ;;  %v1083_v14 = vld [vmem:[%s2322_s1 + $0x90] sm:$0xf]  ;;  %v1468_v17 = vld [vmem:[%s2322_s1 + $0x4] sm:$0xf0]  ;;  %v1148_v22 = vor.u32 %v1502_v10, %v1147_v9 }
  0x14   :  { %652 = vmatpush.bf16.msra.mxu0 %v1036_v56  ;;  %v1486_v15 = vld [vmem:[%s2322_s1 + $0x94] sm:$0xf0]  ;;  %v22_v18 = vld [vmem:[%s2321_s0] sm:$0xff]  ;;  %v1500_v21 = vld [vmem:[%s2322_s1 + $0x104] sm:$0xf0]  ;;  %v1212_v23 = vor.u32 %v1518_v13, %v1211_v11  ;;  %v1012_v34 = vor.u32 %v1468_v17, %v1011_v16 }
  0x15   :  { %678 = vmatpush.bf16.msra.mxu2 %v1164_v57  ;;  %v1139_v20 = vld [vmem:[%s2322_s1 + $0x100] sm:$0xf]  ;;  %26 = vst [vmem:[#allocation1] ss:$4 sm:$0xff] %v22_v18  ;;  %v1516_v25 = vld [vmem:[%s2322_s1 + $0x184] sm:$0xf0]  ;;  %v1084_v27 = vor.u32 %v1486_v15, %v1083_v14 }
  0x16   :  { %691 = vmatpush.bf16.msra.mxu3 %v1228_v58  ;;  %v1203_v24 = vld [vmem:[%s2322_s1 + $0x180] sm:$0xf]  ;;  %v1323_v26 = vld [vmem:[%s2322_s1 + $0x270] sm:$0xf]  ;;  %v1546_v28 = vld [vmem:[%s2322_s1 + $0x274] sm:$0xf0]  ;;  %v1140_v38 = vor.u32 %v1500_v21, %v1139_v20 }
  0x17   :  { %665 = vmatpush.bf16.msra.mxu1 %v1100_v62  ;;  %v1481_v29 = vld [vmem:[%s2322_s1 + $0x74] sm:$0xf]  ;;  %v1069_v30 = vld [vmem:[%s2322_s1 + $0x78] sm:$0xf0]  ;;  %v1075_v31 = vld [vmem:[%s2322_s1 + $0x80] sm:$0xf]  ;;  %v1204_v39 = vor.u32 %v1516_v25, %v1203_v24  ;;  %v1324_v43 = vor.u32 %v1546_v28, %v1323_v26 }
  0x18   :  { %653 = vmatpush.bf16.msra.mxu0 %v1028_v4  ;;  %v1484_v32 = vld [vmem:[%s2322_s1 + $0x84] sm:$0xf0]  ;;  %v1387_v33 = vld [vmem:[%s2322_s1 + $0x2f0] sm:$0xf]  ;;  %v1562_v35 = vld [vmem:[%s2322_s1 + $0x2f4] sm:$0xf0]  ;;  %v1072_v44 = vor.u32 %v1481_v29, %v1069_v30 }
  0x19   :  { %679 = vmatpush.bf16.msra.mxu2 %v1156_v7  ;;  %v1395_v36 = vld [vmem:[%s2322_s1 + $0x300] sm:$0xf]  ;;  %v1564_v37 = vld [vmem:[%s2322_s1 + $0x304] sm:$0xf0]  ;;  %v1497_v40 = vld [vmem:[%s2322_s1 + $0xf4] sm:$0xf]  ;;  %v1076_v48 = vor.u32 %v1484_v32, %v1075_v31  ;;  %v1388_v53 = vor.u32 %v1562_v35, %v1387_v33 }
  0x1a   :  { %692 = vmatpush.bf16.msra.mxu3 %v1220_v8  ;;  %v1133_v41 = vld [vmem:[%s2322_s1 + $0xf8] sm:$0xf0]  ;;  %v1315_v42 = vld [vmem:[%s2322_s1 + $0x260] sm:$0xf]  ;;  %v1544_v45 = vld [vmem:[%s2322_s1 + $0x264] sm:$0xf0]  ;;  %v1396_v50 = vor.u32 %v1564_v37, %v1395_v36 }
  0x1b   :  { %666 = vmatpush.bf16.msra.mxu1 %v1092_v12  ;;  %v1479_v46 = vld [vmem:[%s2322_s1 + $0x64] sm:$0xf]  ;;  %v1061_v47 = vld [vmem:[%s2322_s1 + $0x68] sm:$0xf0]  ;;  %v1379_v54 = vld [vmem:[%s2322_s1 + $0x2e0] sm:$0xf]  ;;  %v1136_v56 = vor.u32 %v1497_v40, %v1133_v41  ;;  %v1316_v60 = vor.u32 %v1544_v45, %v1315_v42 }
  0x1c   :  { %654 = vmatpush.bf16.msra.mxu0 %v1020_v19  ;;  %v31_v49 = vld.sshfl [vmem:[#allocation1 + $0x10] sm:$0xff pattern:$0x73625140]  ;;  %v29_v51 = vld.sshfl [vmem:[#allocation1] sm:$0xff pattern:$0x73625140]  ;;  %v1064_v61 = vor.u32 %v1479_v46, %v1061_v47 }
  0x1d   :  { %680 = vmatpush.bf16.msra.mxu2 %v1148_v22  ;;  %v1877_v52 = vpack.c.bf16 %v31_v49, %v31_v49  ;;  %v32_v55 = vld.sshfl [vmem:[#allocation1 + $0x18] sm:$0xff pattern:$0x73625140]  ;;  %v1560_v57 = vld [vmem:[%s2322_s1 + $0x2e4] sm:$0xf0]  ;;  %v1885_v58 = vpack.c.bf16 %v29_v51, %v29_v51 }
  0x1e   :  { %693 = vmatpush.bf16.msra.mxu3 %v1212_v23  ;;  %v30_v59 = vld.sshfl [vmem:[#allocation1 + $0x8] sm:$0xff pattern:$0x73625140]  ;;  %v1495_v62 = vld [vmem:[%s2322_s1 + $0xe4] sm:$0xf]  ;;  %v1905_v4 = vpack.c.bf16 %v32_v55, %v32_v55  ;;  %v1380_v6 = vor.u32 %v1560_v57, %v1379_v54 }
  0x1f   :  { %667 = vmatpush.bf16.msra.mxu1 %v1084_v27  ;;  %v1125_v63 = vld [vmem:[%s2322_s1 + $0xe8] sm:$0xf0]  ;;  %v1307_v0 = vld [vmem:[%s2322_s1 + $0x250] sm:$0xf]  ;;  %v1542_v1 = vld [vmem:[%s2322_s1 + $0x254] sm:$0xf0]  ;;  %v1907_v5 = vpack.c.bf16 %v30_v59, %v30_v59 }
  0x20   :  { %655 = vmatpush.bf16.msra.mxu0 %v1012_v34  ;;  %v1477_v2 = vld [vmem:[%s2322_s1 + $0x54] sm:$0xf]  ;;  %v1053_v3 = vld [vmem:[%s2322_s1 + $0x58] sm:$0xf0]  ;;  %v1128_v7 = vor.u32 %v1495_v62, %v1125_v63  ;;  %v1371_v8 = vld [vmem:[%s2322_s1 + $0x2d0] sm:$0xf]  ;;  %v1308_v10 = vor.u32 %v1542_v1, %v1307_v0 }
  0x21   :  { %681 = vmatpush.bf16.msra.mxu2 %v1140_v38  ;;  %v1558_v9 = vld [vmem:[%s2322_s1 + $0x2d4] sm:$0xf0]  ;;  %v1056_v11 = vor.u32 %v1477_v2, %v1053_v3  ;;  %v1493_v12 = vld [vmem:[%s2322_s1 + $0xd4] sm:$0xf]  ;;  %v1117_v13 = vld [vmem:[%s2322_s1 + $0xd8] sm:$0xf0] }
  0x22   :  { %694 = vmatpush.bf16.msra.mxu3 %v1204_v39  ;;  %v1299_v14 = vld [vmem:[%s2322_s1 + $0x240] sm:$0xf]  ;;  %v1540_v15 = vld [vmem:[%s2322_s1 + $0x244] sm:$0xf0]  ;;  %v1475_v16 = vld [vmem:[%s2322_s1 + $0x44] sm:$0xf]  ;;  %v1372_v18 = vor.u32 %v1558_v9, %v1371_v8  ;;  %v1120_v19 = vor.u32 %v1493_v12, %v1117_v13 }
  0x23   :  { %668 = vmatpush.bf16.msra.mxu1 %v1076_v48  ;;  %656 = vmatmul.bf16.vlgmr.msra.gmra.mxu0 %v1885_v58  ;;  %v1045_v17 = vld [vmem:[%s2322_s1 + $0x48] sm:$0xf0]  ;;  %v1363_v20 = vld [vmem:[%s2322_s1 + $0x2c0] sm:$0xf]  ;;  %v1556_v21 = vld [vmem:[%s2322_s1 + $0x2c4] sm:$0xf0]  ;;  %v1300_v22 = vor.u32 %v1540_v15, %v1299_v14 }
  0x24   :  { %700 = vmatpush.bf16.msrb.mxu0 %v1324_v43  ;;  %682 = vmatmul.bf16.vlgmr.msra.gmra.mxu2 %v1877_v52  ;;  %v1048_v23 = vor.u32 %v1475_v16, %v1045_v17  ;;  %v1491_v24 = vld [vmem:[%s2322_s1 + $0xc4] sm:$0xf]  ;;  %v1109_v25 = vld [vmem:[%s2322_s1 + $0xc8] sm:$0xf0]  ;;  %v1291_v26 = vld [vmem:[%s2322_s1 + $0x230] sm:$0xf]  ;;  %v1364_v30 = vor.u32 %v1556_v21, %v1363_v20 }
  0x25   :  { %733 = vmatpush.bf16.msrb.mxu2 %v1396_v50  ;;  %695 = vmatmul.bf16.vlgmr.msra.gmra.mxu3 %v1905_v4  ;;  %v1538_v27 = vld [vmem:[%s2322_s1 + $0x234] sm:$0xf0]  ;;  %v1473_v28 = vld [vmem:[%s2322_s1 + $0x34] sm:$0xf]  ;;  %v1037_v29 = vld [vmem:[%s2322_s1 + $0x38] sm:$0xf0]  ;;  %v1112_v32 = vor.u32 %v1491_v24, %v1109_v25 }
  0x26   :  { %739 = vmatpush.bf16.msrb.mxu3 %v1072_v44  ;;  %669 = vmatmul.bf16.vlgmr.msra.gmra.mxu1 %v1907_v5  ;;  %v1355_v31 = vld [vmem:[%s2322_s1 + $0x2b0] sm:$0xf]  ;;  %v1554_v33 = vld [vmem:[%s2322_s1 + $0x2b4] sm:$0xf0]  ;;  %v1489_v34 = vld [vmem:[%s2322_s1 + $0xb4] sm:$0xf]  ;;  %v1292_v36 = vor.u32 %v1538_v27, %v1291_v26  ;;  %v1040_v37 = vor.u32 %v1473_v28, %v1037_v29 }
  0x27   :  { %713 = vmatpush.bf16.msrb.mxu1 %v1388_v53  ;;  %v23_v35 = vld [vmem:[%s2321_s0 + $0x8] sm:$0x3f]  ;;  %v1101_v38 = vld [vmem:[%s2322_s1 + $0xb8] sm:$0xf0]  ;;  %v1283_v39 = vld [vmem:[%s2322_s1 + $0x220] sm:$0xf]  ;;  %v1356_v43 = vor.u32 %v1554_v33, %v1355_v31 }
  0x28   :  { %701 = vmatpush.bf16.msrb.mxu0 %v1316_v60  ;;  %28 = vst [vmem:[#allocation1 + $0x20] ss:$4 sm:$0xff] %v23_v35  ;;  %v1536_v40 = vld [vmem:[%s2322_s1 + $0x224] sm:$0xf0]  ;;  %v1471_v41 = vld [vmem:[%s2322_s1 + $0x24] sm:$0xf]  ;;  %v1104_v44 = vor.u32 %v1489_v34, %v1101_v38 }
  0x29   :  { %752 = vmatpush.bf16.msra.mxu2 %v1136_v56  ;;  %v1029_v42 = vld [vmem:[%s2322_s1 + $0x28] sm:$0xf0]  ;;  %v1347_v45 = vld [vmem:[%s2322_s1 + $0x2a0] sm:$0xf]  ;;  %v1552_v46 = vld [vmem:[%s2322_s1 + $0x2a4] sm:$0xf0]  ;;  %v1284_v48 = vor.u32 %v1536_v40, %v1283_v39 }
  0x2a   :  { %740 = vmatpush.bf16.msrb.mxu3 %v1064_v61  ;;  %v1487_v47 = vld [vmem:[%s2322_s1 + $0xa4] sm:$0xf]  ;;  %v1032_v49 = vor.u32 %v1471_v41, %v1029_v42  ;;  %v1093_v50 = vld [vmem:[%s2322_s1 + $0xa8] sm:$0xf0]  ;;  %v1275_v51 = vld [vmem:[%s2322_s1 + $0x210] sm:$0xf]  ;;  %v1348_v57 = vor.u32 %v1552_v46, %v1347_v45 }
  0x2b   :  { %714 = vmatpush.bf16.msrb.mxu1 %v1380_v6  ;;  %v1534_v53 = vld [vmem:[%s2322_s1 + $0x214] sm:$0xf0]  ;;  %v1469_v54 = vld [vmem:[%s2322_s1 + $0x14] sm:$0xf]  ;;  %v1021_v55 = vld [vmem:[%s2322_s1 + $0x18] sm:$0xf0]  ;;  %v1096_v62 = vor.u32 %v1487_v47, %v1093_v50 }
  0x2c   :  { %702 = vmatpush.bf16.msrb.mxu0 %v1308_v10  ;;  %v1339_v56 = vld [vmem:[%s2322_s1 + $0x290] sm:$0xf]  ;;  %v1550_v59 = vld [vmem:[%s2322_s1 + $0x294] sm:$0xf0]  ;;  %v1485_v60 = vld [vmem:[%s2322_s1 + $0x94] sm:$0xf]  ;;  %v1276_v1 = vor.u32 %v1534_v53, %v1275_v51  ;;  %v1024_v2 = vor.u32 %v1469_v54, %v1021_v55 }
  0x2d   :  { %753 = vmatpush.bf16.msra.mxu2 %v1128_v7  ;;  %v1085_v61 = vld [vmem:[%s2322_s1 + $0x98] sm:$0xf0]  ;;  %v1267_v63 = vld [vmem:[%s2322_s1 + $0x200] sm:$0xf]  ;;  %v1532_v3 = vld [vmem:[%s2322_s1 + $0x204] sm:$0xf0]  ;;  %v1340_v12 = vor.u32 %v1550_v59, %v1339_v56 }
  0x2e   :  { %741 = vmatpush.bf16.msrb.mxu3 %v1056_v11  ;;  %v1467_v7 = vld [vmem:[%s2322_s1 + $0x4] sm:$0xf]  ;;  %v1013_v8 = vld [vmem:[%s2322_s1 + $0x8] sm:$0xf0]  ;;  %v1513_v9 = vld [vmem:[%s2322_s1 + $0x174] sm:$0xf]  ;;  %v1088_v16 = vor.u32 %v1485_v60, %v1085_v61  ;;  %v1268_v20 = vor.u32 %v1532_v3, %v1267_v63 }
  0x2f   :  { %715 = vmatpush.bf16.msrb.mxu1 %v1372_v18  ;;  %v35_v0 = vld.sshfl [vmem:[#allocation1 + $0x30] sm:$0xff pattern:$0x73625140]  ;;  %v1197_v10 = vld [vmem:[%s2322_s1 + $0x178] sm:$0xf0]  ;;  %v1016_v21 = vor.u32 %v1467_v7, %v1013_v8 }
  0x30   :  { %703 = vmatpush.bf16.msrb.mxu0 %v1300_v22  ;;  %v2030_v6 = vpack.c.bf16 %v35_v0, %v35_v0  ;;  %v1545_v11 = vld [vmem:[%s2322_s1 + $0x274] sm:$0xf]  ;;  %v1325_v13 = vld [vmem:[%s2322_s1 + $0x278] sm:$0xf0]  ;;  %v1331_v14 = vld [vmem:[%s2322_s1 + $0x280] sm:$0xf]  ;;  %v1200_v24 = vor.u32 %v1513_v9, %v1197_v10 }
  0x31   :  { %754 = vmatpush.bf16.msra.mxu2 %v1120_v19  ;;  %v1548_v15 = vld [vmem:[%s2322_s1 + $0x284] sm:$0xf0]  ;;  %v1483_v17 = vld [vmem:[%s2322_s1 + $0x84] sm:$0xf]  ;;  %v1077_v18 = vld [vmem:[%s2322_s1 + $0x88] sm:$0xf0]  ;;  %v1328_v25 = vor.u32 %v1545_v11, %v1325_v13 }
  0x32   :  { %742 = vmatpush.bf16.msrb.mxu3 %v1048_v23  ;;  %v1529_v19 = vld [vmem:[%s2322_s1 + $0x1f4] sm:$0xf]  ;;  %v33_v22 = vld.sshfl [vmem:[#allocation1 + $0x20] sm:$0xff pattern:$0x73625140]  ;;  %v1332_v29 = vor.u32 %v1548_v15, %v1331_v14  ;;  %v1080_v33 = vor.u32 %v1483_v17, %v1077_v18 }
  0x33   :  { %716 = vmatpush.bf16.msrb.mxu1 %v1364_v30  ;;  %v1261_v23 = vld [vmem:[%s2322_s1 + $0x1f8] sm:$0xf0]  ;;  %v1561_v26 = vld [vmem:[%s2322_s1 + $0x2f4] sm:$0xf]  ;;  %v1511_v28 = vld [vmem:[%s2322_s1 + $0x164] sm:$0xf] }
  0x34   :  { %704 = vmatpush.bf16.msrb.mxu0 %v1292_v36  ;;  %1401 = vmatmul.msk.bf16.vlgmr.msrb.gmra.mxu2 %vm644_vm0, %v2030_v6  ;;  %v1389_v27 = vld [vmem:[%s2322_s1 + $0x2f8] sm:$0xf0]  ;;  %v34_v30 = vld.sshfl [vmem:[#allocation1 + $0x28] sm:$0xff pattern:$0x73625140]  ;;  %v1264_v36 = vor.u32 %v1529_v19, %v1261_v23 }
  0x35   :  { %755 = vmatpush.bf16.msra.mxu2 %v1112_v32  ;;  %v1189_v31 = vld [vmem:[%s2322_s1 + $0x168] sm:$0xf0]  ;;  %v2082_v32 = vpack.c.bf16 %v33_v22, %v33_v22  ;;  %v1543_v34 = vld [vmem:[%s2322_s1 + $0x264] sm:$0xf]  ;;  %v2093_v39 = vpack.c.bf16 %v34_v30, %v34_v30  ;;  %v1509_v45 = vld [vmem:[%s2322_s1 + $0x154] sm:$0xf] }
  0x36   :  { %743 = vmatpush.bf16.msrb.mxu3 %v1040_v37  ;;  %v1317_v35 = vld [vmem:[%s2322_s1 + $0x268] sm:$0xf0]  ;;  %v1392_v37 = vor.u32 %v1561_v26, %v1389_v27  ;;  %v1527_v38 = vld [vmem:[%s2322_s1 + $0x1e4] sm:$0xf]  ;;  %v1192_v40 = vor.u32 %v1511_v28, %v1189_v31  ;;  %v1181_v46 = vld [vmem:[%s2322_s1 + $0x158] sm:$0xf0] }
  0x37   :  { %717 = vmatpush.bf16.msrb.mxu1 %v1356_v43  ;;  %v1253_v41 = vld [vmem:[%s2322_s1 + $0x1e8] sm:$0xf0]  ;;  %v1559_v42 = vld [vmem:[%s2322_s1 + $0x2e4] sm:$0xf]  ;;  %v1541_v47 = vld [vmem:[%s2322_s1 + $0x254] sm:$0xf]  ;;  %v1184_v53 = vor.u32 %v1509_v45, %v1181_v46 }
  0x38   :  { %705 = vmatpush.bf16.msrb.mxu0 %v1284_v48  ;;  %v1381_v43 = vld [vmem:[%s2322_s1 + $0x2e8] sm:$0xf0]  ;;  %v1309_v48 = vld [vmem:[%s2322_s1 + $0x258] sm:$0xf0]  ;;  %v1525_v51 = vld [vmem:[%s2322_s1 + $0x1d4] sm:$0xf] }
  0x39   :  { %756 = vmatpush.bf16.msra.mxu2 %v1104_v44  ;;  %v1320_v44 = vor.u32 %v1543_v34, %v1317_v35  ;;  %v1384_v50 = vor.u32 %v1559_v42, %v1381_v43  ;;  %v1245_v54 = vld [vmem:[%s2322_s1 + $0x1d8] sm:$0xf0]  ;;  %v1557_v55 = vld [vmem:[%s2322_s1 + $0x2d4] sm:$0xf]  ;;  %v1507_v59 = vld [vmem:[%s2322_s1 + $0x144] sm:$0xf] }
  0x3a   :  { %744 = vmatpush.bf16.msrb.mxu3 %v1032_v49  ;;  %v1256_v49 = vor.u32 %v1527_v38, %v1253_v41  ;;  %v1373_v56 = vld [vmem:[%s2322_s1 + $0x2d8] sm:$0xf0]  ;;  %v1173_v60 = vld [vmem:[%s2322_s1 + $0x148] sm:$0xf0]  ;;  %v1539_v61 = vld [vmem:[%s2322_s1 + $0x244] sm:$0xf]  ;;  %v1248_v63 = vor.u32 %v1525_v51, %v1245_v54 }
  0x3b   :  { %718 = vmatpush.bf16.msrb.mxu1 %v1348_v57  ;;  %v1312_v57 = vor.u32 %v1541_v47, %v1309_v48  ;;  %v1376_v0 = vor.u32 %v1557_v55, %v1373_v56  ;;  %v1176_v3 = vor.u32 %v1507_v59, %v1173_v60  ;;  %v1555_v7 = vld [vmem:[%s2322_s1 + $0x2c4] sm:$0xf]  ;;  %v1505_v9 = vld [vmem:[%s2322_s1 + $0x134] sm:$0xf]  ;;  %v1165_v10 = vld [vmem:[%s2322_s1 + $0x138] sm:$0xf0] }
  0x3c   :  { %706 = vmatpush.bf16.msrb.mxu0 %v1276_v1  ;;  %v1523_v1 = vld [vmem:[%s2322_s1 + $0x1c4] sm:$0xf] }
  0x3d   :  { %757 = vmatpush.bf16.msra.mxu2 %v1096_v62  ;;  %v1301_v62 = vld [vmem:[%s2322_s1 + $0x248] sm:$0xf0] }
  0x3e   :  { %745 = vmatpush.bf16.msrb.mxu3 %v1024_v2  ;;  %v1237_v2 = vld [vmem:[%s2322_s1 + $0x1c8] sm:$0xf0]  ;;  %v1304_v8 = vor.u32 %v1539_v61, %v1301_v62 }
  0x3f   :  { %719 = vmatpush.bf16.msrb.mxu1 %v1340_v12 }
  0x40   :  { %707 = vmatpush.bf16.msrb.mxu0 %v1268_v20 }
  0x41   :  { %758 = vmatpush.bf16.msra.mxu2 %v1088_v16 }
  0x42   :  { %746 = vmatpush.bf16.msrb.mxu3 %v1016_v21 }
  0x43   :  { %720 = vmatpush.bf16.msrb.mxu1 %v1332_v29  ;;  %708 = vmatmul.bf16.vlgmr.msrb.gmra.mxu0 %v2082_v32 }
  0x44   :  { %765 = vmatpush.bf16.msra.mxu0 %v1200_v24 }
  0x45   :  { %759 = vmatpush.bf16.msra.mxu2 %v1080_v33  ;;  %747 = vmatmul.bf16.vlgmr.msrb.gmra.mxu3 %v1885_v58  ;;  %v1365_v58 = vld [vmem:[%s2322_s1 + $0x2c8] sm:$0xf0] }
  0x46   :  { %791 = vmatpush.bf16.msra.mxu3 %v1328_v25  ;;  %721 = vmatmul.bf16.vlgmr.msrb.gmra.mxu1 %v2093_v39 }
  0x47   :  { %778 = vmatpush.bf16.msra.mxu1 %v1264_v36 }
  0x48   :  { %766 = vmatpush.bf16.msra.mxu0 %v1192_v40  ;;  %760 = vmatmul.bf16.vlgmr.msra.gmra.mxu2 %v1907_v5 }
  0x49   :  { %804 = vmatpush.bf16.msrb.mxu2 %v1392_v37 }
  0x4a   :  { %792 = vmatpush.bf16.msra.mxu3 %v1320_v44 }
  0x4b   :  { %779 = vmatpush.bf16.msra.mxu1 %v1256_v49 }
  0x4c   :  { %767 = vmatpush.bf16.msra.mxu0 %v1184_v53 }
  0x4d   :  { %805 = vmatpush.bf16.msrb.mxu2 %v1384_v50 }
  0x4e   :  { %793 = vmatpush.bf16.msra.mxu3 %v1312_v57 }
  0x4f   :  { %10 = vsyncpa [#allocation3], 0  ;;  %v1537_v11 = vld [vmem:[%s2322_s1 + $0x234] sm:$0xf]  ;;  %v1293_v12 = vld [vmem:[%s2322_s1 + $0x238] sm:$0xf0]  ;;  %780 = vmatpush.bf16.msra.mxu1 %v1248_v63  ;;  %v1240_v5 = vor.u32 %v1523_v1, %v1237_v2  ;;  %v1368_v13 = vor.u32 %v1555_v7, %v1365_v58  ;;  %v1168_v15 = vor.u32 %v1505_v9, %v1165_v10 }
  0x50   :  { %v1521_v14 = vld [vmem:[%s2322_s1 + $0x1b4] sm:$0xf]  ;;  %768 = vmatpush.bf16.msra.mxu0 %v1176_v3  ;;  %v1229_v16 = vld [vmem:[%s2322_s1 + $0x1b8] sm:$0xf0]  ;;  %v1296_v19 = vor.u32 %v1537_v11, %v1293_v12  ;;  %v1503_v20 = vld [vmem:[%s2322_s1 + $0x124] sm:$0xf] }
  0x51   :  { %806 = vmatpush.bf16.msrb.mxu2 %v1376_v0  ;;  %v1553_v17 = vld [vmem:[%s2322_s1 + $0x2b4] sm:$0xf]  ;;  %v1357_v18 = vld [vmem:[%s2322_s1 + $0x2b8] sm:$0xf0]  ;;  %v1157_v21 = vld [vmem:[%s2322_s1 + $0x128] sm:$0xf0]  ;;  %v1232_v24 = vor.u32 %v1521_v14, %v1229_v16 }
  0x52   :  { %794 = vmatpush.bf16.msra.mxu3 %v1304_v8  ;;  %v1535_v22 = vld [vmem:[%s2322_s1 + $0x224] sm:$0xf]  ;;  %v1285_v23 = vld [vmem:[%s2322_s1 + $0x228] sm:$0xf0]  ;;  %v1360_v25 = vor.u32 %v1553_v17, %v1357_v18  ;;  %v1160_v27 = vor.u32 %v1503_v20, %v1157_v21  ;;  %v1501_v33 = vld [vmem:[%s2322_s1 + $0x114] sm:$0xf] }
  0x53   :  { %781 = vmatpush.bf16.msra.mxu1 %v1240_v5  ;;  %v1519_v26 = vld [vmem:[%s2322_s1 + $0x1a4] sm:$0xf]  ;;  %v1221_v28 = vld [vmem:[%s2322_s1 + $0x1a8] sm:$0xf0]  ;;  %v1288_v31 = vor.u32 %v1535_v22, %v1285_v23  ;;  %v1149_v34 = vld [vmem:[%s2322_s1 + $0x118] sm:$0xf0] }
  0x54   :  { %769 = vmatpush.bf16.msra.mxu0 %v1168_v15  ;;  %v1551_v29 = vld [vmem:[%s2322_s1 + $0x2a4] sm:$0xf]  ;;  %v1349_v30 = vld [vmem:[%s2322_s1 + $0x2a8] sm:$0xf0]  ;;  %v1533_v35 = vld [vmem:[%s2322_s1 + $0x214] sm:$0xf]  ;;  %v1224_v37 = vor.u32 %v1519_v26, %v1221_v28  ;;  %v1152_v41 = vor.u32 %v1501_v33, %v1149_v34 }
  0x55   :  { %807 = vmatpush.bf16.msrb.mxu2 %v1368_v13  ;;  %v1277_v36 = vld [vmem:[%s2322_s1 + $0x218] sm:$0xf0]  ;;  %v1352_v38 = vor.u32 %v1551_v29, %v1349_v30  ;;  %v1517_v40 = vld [vmem:[%s2322_s1 + $0x194] sm:$0xf]  ;;  %v1499_v46 = vld [vmem:[%s2322_s1 + $0x104] sm:$0xf] }
  0x56   :  { %795 = vmatpush.bf16.msra.mxu3 %v1296_v19  ;;  %v1213_v42 = vld [vmem:[%s2322_s1 + $0x198] sm:$0xf0]  ;;  %v1549_v43 = vld [vmem:[%s2322_s1 + $0x294] sm:$0xf]  ;;  %v1280_v45 = vor.u32 %v1533_v35, %v1277_v36  ;;  %v1141_v47 = vld [vmem:[%s2322_s1 + $0x108] sm:$0xf0] }
  0x57   :  { %782 = vmatpush.bf16.msra.mxu1 %v1232_v24  ;;  %v1341_v44 = vld [vmem:[%s2322_s1 + $0x298] sm:$0xf0]  ;;  %v1531_v48 = vld [vmem:[%s2322_s1 + $0x204] sm:$0xf]  ;;  %v1269_v49 = vld [vmem:[%s2322_s1 + $0x208] sm:$0xf0]  ;;  %v1216_v53 = vor.u32 %v1517_v40, %v1213_v42  ;;  %v1144_v55 = vor.u32 %v1499_v46, %v1141_v47 }
  0x58   :  { %770 = vmatpush.bf16.msra.mxu0 %v1160_v27  ;;  %v1563_v50 = vld [vmem:[%s2322_s1 + $0x304] sm:$0xf]  ;;  %v1397_v51 = vld [vmem:[%s2322_s1 + $0x308] sm:$0xf0]  ;;  %v1344_v54 = vor.u32 %v1549_v43, %v1341_v44  ;;  %v1272_v59 = vor.u32 %v1531_v48, %v1269_v49  ;;  %v1572_v1 = vld [vmem:[%s2324_s3 + $0x38] sm:$0xff]  ;;  %s1609_s13 = smov [#allocation2]  }
  0x59   :  { %808 = vmatpush.bf16.msrb.mxu2 %v1360_v25  ;;  %v1515_v56 = vld [vmem:[%s2322_s1 + $0x184] sm:$0xf]  ;;  %v1205_v57 = vld [vmem:[%s2322_s1 + $0x188] sm:$0xf0]  ;;  %v1400_v62 = vor.u32 %v1563_v50, %v1397_v51  ;;  %v1571_v2 = vld [vmem:[%s2324_s3 + $0x30] sm:$0xff]  ;;  %s998_s14 = sshll.u32 %s1609_s13, 4  ;;  %s999_s14 = int_to_ptr.vmem [resolvable:$true] %s998_s14 }
  0x5a   :  { %796 = vmatpush.bf16.msra.mxu3 %v1288_v31  ;;  %v1547_v60 = vld [vmem:[%s2322_s1 + $0x284] sm:$0xf]  ;;  %v1333_v61 = vld [vmem:[%s2322_s1 + $0x288] sm:$0xf0]  ;;  %v1208_v63 = vor.u32 %v1515_v56, %v1205_v57  ;;  %v148_v9 = vld [vmem:[%s2323_s2] sm:$0x3] }
  0x5b   :  { %783 = vmatpush.bf16.msra.mxu1 %v1224_v37  ;;  %v1336_v0 = vor.u32 %v1547_v60, %v1333_v61  ;;  %v1565_v58 = vld [vmem:[%s2324_s3] sm:$0xff]  ;;  %v1580_v5 = vld [vmem:[%s2324_s3 + $0x78] sm:$0xff]  ;;  %v150_v13 = vperm.slane %v148_v9, 0  ;;  %v1579_v15 = vld [vmem:[%s2324_s3 + $0x70] sm:$0xff]  ;;  %v151_v44 = vperm.slane %v148_v9, 1  ;;  %s1000_s16 = sshll.u32 %s2326_s5, 4  ;;  %s1001_s16 = int_to_ptr.hbm [resolvable:$true] %s1000_s16 }
  0x5c   :  { %771 = vmatpush.bf16.msra.mxu0 %v1152_v41  ;;  %v1578_v20 = vld [vmem:[%s2324_s3 + $0x68] sm:$0xff]  ;;  %v1577_v24 = vld [vmem:[%s2324_s3 + $0x60] sm:$0xff]  ;;  %v1576_v28 = vld [vmem:[%s2324_s3 + $0x58] sm:$0xff] }
  0x5d   :  { %809 = vmatpush.bf16.msrb.mxu2 %v1352_v38  ;;  %v1575_v34 = vld [vmem:[%s2324_s3 + $0x50] sm:$0xff]  ;;  %v1574_v38 = vld [vmem:[%s2324_s3 + $0x48] sm:$0xff]  ;;  %v1573_v41 = vld [vmem:[%s2324_s3 + $0x40] sm:$0xff] }
  0x5e   :  { %797 = vmatpush.bf16.msra.mxu3 %v1280_v45 }
  0x5f   :  { %784 = vmatpush.bf16.msra.mxu1 %v1216_v53 }
  0x60   :  { %772 = vmatpush.bf16.msra.mxu0 %v1144_v55 }
  0x61   :  { %810 = vmatpush.bf16.msrb.mxu2 %v1344_v54 }
  0x62   :  { %798 = vmatpush.bf16.msra.mxu3 %v1272_v59 }
  0x63   :  { %785 = vmatpush.bf16.msra.mxu1 %v1208_v63  ;;  %773 = vmatmul.bf16.vlgmr.msra.gmra.mxu0 %v1877_v52  ;;  %v1570_v52 = vld [vmem:[%s2324_s3 + $0x28] sm:$0xff] }
  0x64   :  { %824 = vmatpush.bf16.msrb.mxu0 %v1400_v62 }
  0x65   :  { %799 = vmatmul.bf16.vlgmr.msra.gmra.mxu3 %v2082_v32  ;;  %811 = vmatpush.bf16.msrb.mxu2 %v1336_v0  ;;  %v1567_v32 = vld [vmem:[%s2324_s3 + $0x10] sm:$0xff] }
  0x66   :  { %786 = vmatmul.bf16.vlgmr.msra.gmra.mxu1 %v1905_v4  ;;  %v1569_v4 = vld [vmem:[%s2324_s3 + $0x20] sm:$0xff]  ;;  %979 = vmatpush.bf16.msrb.mxu3 %v1580_v5 }
  0x67   :  { %966 = vmatpush.bf16.msrb.mxu1 %v1572_v1 }
  0x68   :  { %812 = vmatmul.bf16.vlgmr.msrb.gmra.mxu2 %v2093_v39  ;;  %v1566_v39 = vld [vmem:[%s2324_s3 + $0x8] sm:$0xff] }
  0x6a   :  { %980 = vmatpush.bf16.msrb.mxu3 %v1579_v15 }
  0x6b   :  { %967 = vmatpush.bf16.msrb.mxu1 %v1571_v2 }
  0x6e   :  { %981 = vmatpush.bf16.msrb.mxu3 %v1578_v20 }
  0x6f   :  { %968 = vmatpush.bf16.msrb.mxu1 %v1570_v52 }
  0x72   :  { %982 = vmatpush.bf16.msrb.mxu3 %v1577_v24 }
  0x73   :  { %1402 = vmatmul.msk.bf16.vlgmr.msrb.gmra.mxu0 %vm644_vm0, %v2030_v6  ;;  %969 = vmatpush.bf16.msrb.mxu1 %v1569_v4  ;;  %v1568_v6 = vld [vmem:[%s2324_s3 + $0x18] sm:$0xff]  ;;  %v1582_v4 = vld [vmem:[%s2325_s4] ss:$0 sm:$0xff] }
  0x76   :  { %983 = vmatpush.bf16.msrb.mxu3 %v1576_v28 }
  0x77   :  { %970 = vmatpush.bf16.msrb.mxu1 %v1568_v6 }
  0x7a   :  { %984 = vmatpush.bf16.msrb.mxu3 %v1575_v34 }
  0x7b   :  { %971 = vmatpush.bf16.msrb.mxu1 %v1567_v32 }
  0x7e   :  { %985 = vmatpush.bf16.msrb.mxu3 %v1574_v38 }
  0x7f   :  { %972 = vmatpush.bf16.msrb.mxu1 %v1566_v39 }
  0x82   :  { %986 = vmatpush.bf16.msrb.mxu3 %v1573_v41 }
  0x83   :  { %973 = vmatpush.bf16.msrb.mxu1 %v1565_v58 }
  0xa0   :  { %v657_v3 = vpop.f32.mrf.mxu0 }
  0xa1   :  { %v658_v16 = vadd.f32 %v657_v3, %v150_v13 }
  0xa3   :  { %v670_v7 = vpop.f32.mrf.mxu1 }
  0xa4   :  { %v671_v18 = vadd.f32 %v670_v7, %v658_v16 }
  0xa7   :  { %v683_v8 = vpop.f32.mrf.mxu2 }
  0xa8   :  { %v696_v10 = vpop.f32.mrf.mxu3  ;;  %v659_v11 = vpop.f32.mrf.mxu0  ;;  %v684_v19 = vadd.f32 %v683_v8, %v671_v18 }
  0xaa   :  { %v697_v22 = vadd.f32 %v696_v10, %v684_v19 }
  0xab   :  { %v672_v12 = vpop.f32.mrf.mxu1 }
  0xaf   :  { %v685_v14 = vpop.f32.mrf.mxu2 }
  0xb0   :  { %v698_v17 = vpop.f32.mrf.mxu3 }
  0xb7   :  { %v735_v21 = vpop.f32.mrf.mxu2 }
  0xbf   :  { %v737_v30 = vpop.f32.mrf.mxu2 }
  0xc0   :  { %v709_v23 = vpop.f32.mrf.mxu0 }
  0xc1   :  { %v710_v25 = vadd.f32 %v709_v23, %v697_v22 }
  0xc3   :  { %v722_v26 = vpop.f32.mrf.mxu1 }
  0xc4   :  { %v723_v27 = vadd.f32 %v722_v26, %v710_v25 }
  0xc6   :  { %v736_v29 = vadd.f32 %v735_v21, %v723_v27 }
  0xc8   :  { %v830_v31 = vmax.f32 %v736_v29, 0.0  ;;  %v711_v33 = vpop.f32.mrf.mxu0  ;;  %v748_v36 = vpop.f32.mrf.mxu3 }
  0xc9   :  { %v749_v45 = vadd.f32 %v748_v36, %v151_v44 }
  0xca   :  { %v832_v35 = vpack.c.bf16 %v830_v31, %v830_v31 }
  0xcb   :  { %v724_v37 = vpop.f32.mrf.mxu1  ;;  %v761_v40 = vpop.f32.mrf.mxu2 }
  0xcc   :  { %974 = vmatmul.bf16.vlgmr.msrb.gmra.mxu1 %v832_v35  ;;  %v762_v47 = vadd.f32 %v761_v40, %v749_v45 }
  0xd0   :  { %v750_v42 = vpop.f32.mrf.mxu3 }
  0xd3   :  { %v763_v43 = vpop.f32.mrf.mxu2 }
  0xe0   :  { %v774_v46 = vpop.f32.mrf.mxu0 }
  0xe1   :  { %v775_v49 = vadd.f32 %v774_v46, %v762_v47 }
  0xe3   :  { %v787_v48 = vpop.f32.mrf.mxu1 }
  0xe4   :  { %v788_v53 = vadd.f32 %v787_v48, %v775_v49 }
  0xe8   :  { %v800_v50 = vpop.f32.mrf.mxu3  ;;  %v776_v51 = vpop.f32.mrf.mxu0 }
  0xe9   :  { %v801_v55 = vadd.f32 %v800_v50, %v788_v53 }
  0xeb   :  { %v813_v54 = vpop.f32.mrf.mxu2  ;;  %v789_v56 = vpop.f32.mrf.mxu1 }
  0xec   :  { %v814_v57 = vadd.f32 %v813_v54, %v801_v55 }
  0xf0   :  { %v802_v59 = vpop.f32.mrf.mxu3  ;;  %v826_v60 = vpop.f32.mrf.mxu0 }
  0xf1   :  { %v827_v61 = vadd.f32 %v826_v60, %v814_v57 }
  0xf3   :  { %v815_v62 = vpop.f32.mrf.mxu2  ;;  %v831_v63 = vmax.f32 %v827_v61, 0.0 }
  0xf5   :  { %v833_v0 = vpack.c.bf16 %v831_v63, %v831_v63 }
  0xf7   :  { %987 = vmatmul.bf16.vlgmr.msrb.gmra.mxu3 %v833_v0 }
  0xf8   :  { %v828_v1 = vpop.f32.mrf.mxu0 }
 0x149   :  { %v975_v2 = vpop.f32.mrf.mxu1 }
 0x14a   :  { %v976_v6 = vadd.f32 %v1582_v4, %v975_v2 }
 0x151   :  { %v977_v52 = vpop.f32.mrf.mxu1 }
 0x17a   :  { %v988_v32 = vpop.f32.mrf.mxu3 }
 0x17b   :  { %v989_v39 = vadd.f32 %v988_v32, %v976_v6 }
 0x17d   :  { %992 = vst [vmem:[#allocation2] sm:$0x3] %v989_v39 }
 0x17e   :  { %1003 = dma.vmem_to_hbm [thread:$0]  %s999_s14, 32, %s1001_s16, [#allocation3]  }
 0x182   :  { %v990_v3 = vpop.f32.mrf.mxu3 }
 0x183   :  { %1607 = dma.done.wait [#allocation3], 32  }
 0x184   :  { %1608 = vsyncadd [#allocation3], 4294967264 }
 0x185   :  { %1008 = vsyncpa [#allocation3], 1 }

</bundles_post_ra>
